<compile_context>
chip_gen: v7x
topology: tpu7x:2x2x1
jax: 0.10.0
libtpu: 0.0.40
codegen_flags: <defaults>
</compile_context>

<pallas_src>
import functools

import jax
import jax.numpy as jnp
from jax.experimental import pallas as pl
from jax.experimental.pallas import tpu as pltpu


# ----------------------------------------------------------------------------
# Plain-JAX glue: sampling & grouping (matches PointNet++ reference utilities)
# ----------------------------------------------------------------------------
def square_distance(src, dst):
    # src: [B, M, 3], dst: [B, N, 3] -> [B, M, N]
    return jnp.sum((src[:, :, None, :] - dst[:, None, :, :]) ** 2, axis=-1)


def index_points(points, idx):
    # points: [B, N, C], idx: [B, ...] int -> [B, ..., C]
    return jax.vmap(lambda p, i: p[i])(points, idx)


def farthest_point_sample(xyz, npoint):
    # xyz: [B, N, 3] -> [B, npoint] int32
    # TODO(synk): PyTorch reference starts FPS at torch.randint(0, N); we use a
    # deterministic start index 0 so the script is reproducible.  The loop is
    # inherently sequential (npoint dependent argmax steps over [B, N]).
    B, N, _ = xyz.shape

    def body(i, state):
        centroids, distance, farthest = state
        centroids = centroids.at[:, i].set(farthest)
        centroid = index_points(xyz, farthest[:, None])          # [B, 1, 3]
        dist = jnp.sum((xyz - centroid) ** 2, axis=-1)           # [B, N]
        distance = jnp.minimum(distance, dist)
        farthest = jnp.argmax(distance, axis=-1).astype(jnp.int32)
        return centroids, distance, farthest

    centroids = jnp.zeros((B, npoint), jnp.int32)
    distance = jnp.full((B, N), 1e10, jnp.float32)
    farthest = jnp.zeros((B,), jnp.int32)
    centroids, _, _ = jax.lax.fori_loop(0, npoint, body,
                                        (centroids, distance, farthest))
    return centroids


def query_ball_point(radius, nsample, xyz, new_xyz):
    # xyz: [B, N, 3], new_xyz: [B, S, 3] -> [B, S, nsample] int32
    B, N, _ = xyz.shape
    S = new_xyz.shape[1]
    sqrdists = square_distance(new_xyz, xyz)                     # [B, S, N]
    idx = jnp.broadcast_to(jnp.arange(N, dtype=jnp.int32), (B, S, N))
    idx = jnp.where(sqrdists > radius ** 2, N, idx)
    # Partial selection instead of a full O(N log N) sort: the nsample smallest
    # indices (== jnp.sort(idx)[..., :nsample] exactly; out-of-radius points
    # carry the sentinel N and sort last either way).
    group_idx = -jax.lax.top_k(-idx, nsample)[0]                 # ascending
    group_first = jnp.broadcast_to(group_idx[:, :, 0:1], (B, S, nsample))
    group_idx = jnp.where(group_idx == N, group_first, group_idx)
    return group_idx


def sample_and_group(npoint, radius, nsample, xyz, points):
    # xyz: [B, N, 3], points: [B, N, D] or None
    fps_idx = farthest_point_sample(xyz, npoint)                 # [B, S]
    new_xyz = index_points(xyz, fps_idx)                         # [B, S, 3]
    idx = query_ball_point(radius, nsample, xyz, new_xyz)        # [B, S, K]
    grouped_xyz = index_points(xyz, idx)                         # [B, S, K, 3]
    grouped_xyz_norm = grouped_xyz - new_xyz[:, :, None, :]
    if points is not None:
        grouped_points = index_points(points, idx)               # [B, S, K, D]
        new_points = jnp.concatenate([grouped_xyz_norm, grouped_points], -1)
    else:
        new_points = grouped_xyz_norm
    return new_xyz, new_points                                   # [B,S,3],[B,S,K,C]


def sample_and_group_all(xyz, points):
    B, N, C = xyz.shape
    new_xyz = jnp.zeros((B, 1, C), xyz.dtype)
    grouped_xyz = xyz[:, None, :, :]
    if points is not None:
        new_points = jnp.concatenate([grouped_xyz, points[:, None, :, :]], -1)
    else:
        new_points = grouped_xyz
    return new_xyz, new_points


# ----------------------------------------------------------------------------
# Small helpers
# ----------------------------------------------------------------------------
def _round_up(n, m):
    return ((n + m - 1) // m) * m


def _use_bf16_elementwise():
    """bf16 FMA/ReLU path for bf16-capable VPUs (v6e/v7x); f32 on v5e & older."""
    try:
        kind = jax.devices()[0].device_kind.lower()
    except Exception:
        return False
    for old in ("v2", "v3", "v4", "v5"):
        if old in kind:
            return False
    return True


def _vmem_plan():
    """(vmem_limit_bytes, tile_budget_bytes), generation-aware with headroom."""
    try:
        phys = int(pltpu.get_tpu_info().vmem_capacity_bytes)
    except Exception:
        phys = 64 << 20          # conservative: v7x per-TensorCore VMEM
    # Cap at 64 MiB so a v7x TC (64 MiB physical, possibly reported per-chip)
    # never gets a plan sized for v6e's 128 MiB.
    vmem_limit = max(16 << 20, min(int(phys * 0.70), 64 << 20))
    budget = int(vmem_limit * 0.60)
    return vmem_limit, budget


def _kernel_vmem_bytes(TR, tbs, cin_k, chans, bf16_ew):
    """Worst-case per-kernel VMEM at row tile TR: double-buffered inputs and
    outputs plus the in-kernel f32/bf16 temporaries (matmul result, h)."""
    ew = 2 if bf16_ew else 4
    small = 64 * 1024            # s/t vectors, stats blocks, slack
    reqs = []
    L = len(chans)
    c1 = chans[0]
    if L == 1:
        reqs.append(2 * TR * cin_k * 4 + 2 * cin_k * c1 * 2 + 2 * TR * c1 * 2
                    + TR * cin_k * 2 + TR * c1 * 4 + small)
    else:
        # stats-only first pass
        reqs.append(2 * TR * cin_k * 4 + 2 * cin_k * c1 * 2
                    + TR * cin_k * 2 + TR * c1 * 4 + small)
        c2 = chans[1]
        # fused layer-1/2 pass
        reqs.append(2 * TR * cin_k * 4 + 2 * cin_k * c1 * 2 + 2 * c1 * c2 * 2
                    + 2 * TR * c2 * 2
                    + TR * cin_k * 2 + TR * c1 * 4 + TR * c1 * ew
                    + TR * c2 * 4 + small)
        for i in range(2, L):
            ci, co = chans[i - 1], chans[i]
            reqs.append(2 * TR * ci * 2 + 2 * ci * co * 2 + 2 * TR * co * 2
                        + TR * ci * ew + TR * co * 4 + small)
    cl = chans[-1]
    # final BN+ReLU+max kernel
    reqs.append(2 * TR * cl * 2 + 2 * tbs * cl * 4 + TR * cl * ew + small)
    return max(reqs)


def _choose_tile_bs(BS, K, cin_k, chans, bf16_ew, budget_bytes):
    """Largest divisor of B*S (multiple of 8, or the whole axis) whose heaviest
    kernel fits the VMEM budget.  Large TR amortizes the ~0.35us/step overhead
    and keeps the DMA pipeline / MXU fed."""
    cand = sorted({d for d in range(1, BS + 1)
                   if BS % d == 0 and (d % 8 == 0 or d == BS)}, reverse=True)
    for d in cand:
        if _kernel_vmem_bytes(d * K, d, cin_k, chans, bf16_ew) <= budget_bytes:
            return d
    return cand[-1]   # nothing fits the budget; smallest tile, compiler decides


# ----------------------------------------------------------------------------
# Pallas kernels
# ----------------------------------------------------------------------------
def _store_stats(st_ref, z_f32):
    # st_ref block: (2, C).  Row 0 = sum, row 1 = sum of squares.
    # TODO(synk): on v7x, compute sumsq as diag(z^T z) on the MXU to get this
    # reduction off the VPU/XLU slots.
    st_ref[0:1, :] = jnp.sum(z_f32, axis=0, keepdims=True)
    st_ref[1:2, :] = jnp.sum(z_f32 * z_f32, axis=0, keepdims=True)


def _bn_relu_bf16(z, s_ref, t_ref, bf16_ew):
    """Folded training-BN FMA + ReLU; returns a bf16 MXU operand."""
    if bf16_ew:
        h = jnp.maximum(z.astype(jnp.bfloat16) * s_ref[...].astype(jnp.bfloat16)
                        + t_ref[...].astype(jnp.bfloat16), 0)
        return h
    h = jnp.maximum(z.astype(jnp.float32) * s_ref[...] + t_ref[...], 0.0)
    return h.astype(jnp.bfloat16)


def _first_stats_kernel(x_ref, w_ref, st_ref):
    # Layer 1, stats only: no z written to HBM (recomputed in the next pass).
    z = jnp.dot(x_ref[...].astype(jnp.bfloat16), w_ref[...],
                preferred_element_type=jnp.float32)
    _store_stats(st_ref, z)


def _first_full_kernel(x_ref, w_ref, z_ref, st_ref):
    # Single-layer MLP fallback: write z1 + stats.
    z = jnp.dot(x_ref[...].astype(jnp.bfloat16), w_ref[...],
                preferred_element_type=jnp.float32)
    z_ref[...] = z.astype(z_ref.dtype)
    _store_stats(st_ref, z)


def _fused12_kernel(x_ref, w1_ref, s1_ref, t1_ref, w2_ref, z_ref, st_ref, *,
                    bf16_ew):
    # Recompute z1 = x @ W1 (cheap: Cin is tiny), fold BN1 + ReLU, layer-2
    # matmul, emit z2 + stats2 -- one pass over x, no z1 HBM round trip.
    z1 = jnp.dot(x_ref[...].astype(jnp.bfloat16), w1_ref[...],
                 preferred_element_type=jnp.float32)
    h1 = _bn_relu_bf16(z1, s1_ref, t1_ref, bf16_ew)
    z2 = jnp.dot(h1, w2_ref[...], preferred_element_type=jnp.float32)
    z_ref[...] = z2.astype(z_ref.dtype)
    _store_stats(st_ref, z2)


def _mid_kernel(z_ref, s_ref, t_ref, w_ref, zo_ref, st_ref, *, bf16_ew):
    # Layers 3..L: previous layer's folded BN + ReLU, matmul, stats.
    h = _bn_relu_bf16(z_ref[...], s_ref, t_ref, bf16_ew)
    z = jnp.dot(h, w_ref[...], preferred_element_type=jnp.float32)
    zo_ref[...] = z.astype(zo_ref.dtype)
    _store_stats(st_ref, z)


def _final_from_z_kernel(z_ref, s_ref, t_ref, o_ref, *, bf16_ew):
    # Last layer's folded BN + ReLU, then max over the nsample (K) axis.
    # TODO(synk): for deep MLPs, recomputing the last layer from z_{L-1} here
    # would also remove the z_L round trip (bigger win when c_L is largest).
    if bf16_ew:
        h = jnp.maximum(z_ref[...] * s_ref[...].astype(jnp.bfloat16)
                        + t_ref[...].astype(jnp.bfloat16), 0)
    else:
        h = jnp.maximum(z_ref[...].astype(jnp.float32) * s_ref[...]
                        + t_ref[...], 0.0)
    o_ref[...] = jnp.max(h, axis=1).astype(o_ref.dtype)


# ----------------------------------------------------------------------------
# Wrapper: tiled, pipelined MLP -> BN(train) -> ReLU -> max over nsample
# ----------------------------------------------------------------------------
def run_sa_mlp(grouped, layers, cin_k, eps=1e-5, tile_bs=None, bf16_ew=None):
    """grouped: [B, S, K, Cin] f32; layers: list of (w bf16 [Ci_k, Co_pad],
    gamma_pad f32 [Co_pad], beta_pad f32 [Co_pad], cout_real).
    Returns lane-padded max-pooled features [B, S, Cout_pad_last] f32."""
    B, S, K, Cin = grouped.shape
    BS, R = B * S, B * S * K
    if bf16_ew is None:
        bf16_ew = _use_bf16_elementwise()
    chans = [w.shape[1] for (w, _, _, _) in layers]
    vmem_limit, budget = _vmem_plan()

    tbs = tile_bs if tile_bs is not None else _choose_tile_bs(
        BS, K, cin_k, chans, bf16_ew, budget)
    if BS % tbs != 0 or not (tbs % 8 == 0 or tbs == BS):
        raise ValueError(f"invalid row tile {tbs} for B*S={BS}")
    T = BS // tbs
    TR = tbs * K                                   # rows per tile

    cparams = pltpu.CompilerParams(
        dimension_semantics=("parallel",),          # megacore-shardable rows
        vmem_limit_bytes=int(vmem_limit))

    # No 128-lane pre-pad: only align the tiny contraction dim to 16 lanes so
    # the bf16 MXU operand tiles are clean.  x stays f32 (cast in-kernel).
    x = grouped.astype(jnp.float32)
    if Cin != cin_k:
        x = jnp.pad(x, ((0, 0), (0, 0), (0, 0), (0, cin_k - Cin)))
    x = x.reshape(R, cin_k)

    def stats_to_fold(st, gamma, beta, cout_p):
        # Tiny cross-tile reduction + BN fold (exact training-mode batch stats).
        ssum = jnp.sum(st[:, 0, :], axis=0)
        ssq = jnp.sum(st[:, 1, :], axis=0)
        mean = ssum / R
        # Single-pass E[z^2]-mean^2 (f32, clamped): can cancel if |mean|>>std.
        var = jnp.maximum(ssq / R - mean * mean, 0.0)
        inv = jax.lax.rsqrt(var + eps)
        s = (gamma * inv).reshape(1, cout_p)
        t = (beta - mean * gamma * inv).reshape(1, cout_p)
        return s, t

    def row_spec(c):
        return pl.BlockSpec((TR, c), lambda i: (i, 0))

    def full_spec(r, c):
        return pl.BlockSpec((r, c), lambda i: (0, 0))

    def stats_spec(c):
        return pl.BlockSpec((None, 2, c), lambda i: (i, 0, 0))

    def stats_shape(c):
        return jax.ShapeDtypeStruct((T, 2, c), jnp.float32)

    L = len(layers)
    w1, g1, b1, _ = layers[0]
    c1 = w1.shape[1]

    if L == 1:
        z, st1 = pl.pallas_call(
            _first_full_kernel,
            grid=(T,),
            in_specs=[row_spec(cin_k), full_spec(cin_k, c1)],
            out_specs=(row_spec(c1), stats_spec(c1)),
            out_shape=(jax.ShapeDtypeStruct((R, c1), jnp.bfloat16),
                       stats_shape(c1)),
            compiler_params=cparams,
        )(x, w1)
        s, t = stats_to_fold(st1, g1, b1, c1)
        c_last = c1
    else:
        # Pass 1: layer-1 batch statistics only (no z1 writeback).
        st1 = pl.pallas_call(
            _first_stats_kernel,
            grid=(T,),
            in_specs=[row_spec(cin_k), full_spec(cin_k, c1)],
            out_specs=stats_spec(c1),
            out_shape=stats_shape(c1),
            compiler_params=cparams,
        )(x, w1)
        s1, t1 = stats_to_fold(st1, g1, b1, c1)

        # Pass 2: fused layer-1 recompute + BN1/ReLU + layer-2 matmul.
        w2, g2, b2, _ = layers[1]
        c2 = w2.shape[1]
        z, st2 = pl.pallas_call(
            functools.partial(_fused12_kernel, bf16_ew=bf16_ew),
            grid=(T,),
            in_specs=[row_spec(cin_k), full_spec(cin_k, c1),
                      full_spec(1, c1), full_spec(1, c1),
                      full_spec(c1, c2)],
            out_specs=(row_spec(c2), stats_spec(c2)),
            out_shape=(jax.ShapeDtypeStruct((R, c2), jnp.bfloat16),
                       stats_shape(c2)),
            compiler_params=cparams,
        )(x, w1, s1, t1, w2)
        s, t = stats_to_fold(st2, g2, b2, c2)
        c_last = c2

        # Layers 3..L.
        for (w, g, bb, _) in layers[2:]:
            co = w.shape[1]
            z, sto = pl.pallas_call(
                functools.partial(_mid_kernel, bf16_ew=bf16_ew),
                grid=(T,),
                in_specs=[row_spec(c_last), full_spec(1, c_last),
                          full_spec(1, c_last), full_spec(c_last, co)],
                out_specs=(row_spec(co), stats_spec(co)),
                out_shape=(jax.ShapeDtypeStruct((R, co), jnp.bfloat16),
                           stats_shape(co)),
                compiler_params=cparams,
            )(z, s, t, w)
            s, t = stats_to_fold(sto, g, bb, co)
            c_last = co

    # Final: apply last folded BN + ReLU and reduce max over the K axis.
    z3 = z.reshape(BS, K, c_last)
    out = pl.pallas_call(
        functools.partial(_final_from_z_kernel, bf16_ew=bf16_ew),
        grid=(T,),
        in_specs=[pl.BlockSpec((tbs, K, c_last), lambda i: (i, 0, 0)),
                  full_spec(1, c_last), full_spec(1, c_last)],
        out_specs=pl.BlockSpec((tbs, c_last), lambda i: (i, 0)),
        out_shape=jax.ShapeDtypeStruct((BS, c_last), jnp.float32),
        compiler_params=cparams,
    )(z3, s, t)
    return out.reshape(B, S, c_last)


# ----------------------------------------------------------------------------
# Module wrapper (deterministic synthetic parameter init)
# ----------------------------------------------------------------------------
class PointNetSetAbstraction:
    def __init__(self, npoint, radius, nsample, in_channel, mlp, group_all, key,
                 tile_bs=None):
        self.npoint = npoint
        self.radius = radius
        self.nsample = nsample
        self.group_all = group_all
        self.tile_bs = tile_bs
        # Contraction-dim alignment only (16 lanes), not a full 128-lane pad.
        self.cin_k = max(16, _round_up(in_channel, 16))
        self.layers = []
        last, last_pad = in_channel, self.cin_k
        for out_ch in mlp:
            key, k1, k2, k3 = jax.random.split(key, 4)
            out_pad = _round_up(out_ch, 128)
            bound = 1.0 / float(last) ** 0.5
            w = jax.random.uniform(k1, (last, out_ch), jnp.float32, -bound, bound)
            w_pad = jnp.zeros((last_pad, out_pad), jnp.float32)
            w_pad = w_pad.at[:last, :out_ch].set(w)
            gamma = jnp.zeros((out_pad,), jnp.float32).at[:out_ch].set(
                1.0 + 0.1 * jax.random.normal(k2, (out_ch,), jnp.float32))
            beta = jnp.zeros((out_pad,), jnp.float32).at[:out_ch].set(
                0.1 * jax.random.normal(k3, (out_ch,), jnp.float32))
            # Conv2d bias intentionally omitted: training-mode BatchNorm removes
            # the batch mean, so the bias cancels exactly in the forward output.
            self.layers.append((w_pad.astype(jnp.bfloat16), gamma, beta, out_ch))
            last, last_pad = out_ch, out_pad
        self.out_channels = last

    def __call__(self, xyz, points):
        # xyz: [B, 3, N], points: [B, D, N] or None
        xyz_t = jnp.transpose(xyz, (0, 2, 1))
        points_t = jnp.transpose(points, (0, 2, 1)) if points is not None else None
        if self.group_all:
            new_xyz, new_points = sample_and_group_all(xyz_t, points_t)
        else:
            new_xyz, new_points = sample_and_group(
                self.npoint, self.radius, self.nsample, xyz_t, points_t)
        # new_points: [B, S, K, C_in] (channels-last kernel layout)
        feat_pad = run_sa_mlp(new_points.astype(jnp.float32), self.layers,
                              self.cin_k, tile_bs=self.tile_bs)
        # TODO(synk): fold this slice + minor-dim transpose into the consumer
        # (or emit the final kernel channels-first) to save one XLA copy pass.
        feat = feat_pad[..., :self.out_channels]             # strip lane padding
        new_points_out = jnp.transpose(feat, (0, 2, 1))      # [B, D', S]
        new_xyz_out = jnp.transpose(new_xyz, (0, 2, 1))      # [B, 3, S]
        return new_xyz_out, new_points_out


if __name__ == "__main__":
    key = jax.random.PRNGKey(0)
    kx, kp, kw = jax.random.split(key, 3)
    B, N, D = 2, 64, 4
    xyz = jax.random.normal(kx, (B, 3, N), jnp.float32)
    points = jax.random.normal(kp, (B, D, N), jnp.float32)

    # tile_bs=8 -> B*S=32 rows split into 4 row-tiles: exercises the tiled,
    # pipelined grid path and the cross-tile BN statistics reduction.  With
    # tile_bs=None the planner would pick the largest VMEM-fitting tile.
    sa = PointNetSetAbstraction(npoint=16, radius=0.6, nsample=8,
                                in_channel=3 + D, mlp=[16, 32],
                                group_all=False, key=kw, tile_bs=8)

    new_xyz, new_points = sa(xyz, points)
    jax.block_until_ready((new_xyz, new_points))

    assert new_xyz.shape == (B, 3, 16), new_xyz.shape
    assert new_points.shape == (B, 32, 16), new_points.shape
    assert bool(jnp.all(jnp.isfinite(new_points)))
    print("KERNEL_OK")
</pallas_src>

<mosaic_0001>
module attributes {stable_mosaic.version = 11 : i64} {
  func.func @_first_stats_kernel(%arg0: i32, %arg1: memref<64x16xf32, #tpu.memory_space<vmem>>, %arg2: memref<16x128xbf16, #tpu.memory_space<vmem>>, %arg3: memref<1x2x128xf32, #tpu.memory_space<vmem>>) attributes {dimension_semantics = [#tpu.dimension_semantics<parallel>], iteration_bounds = array<i64: 4>, scalar_prefetch = 0 : i64, scratch_operands = 0 : i64, tpu.core_type = #tpu.core_type<tc>, window_params = [{transform_indices = @transform_0, window_bounds = array<i64: 64, 16>}, {pipeline_mode = #tpu.pipeline_mode<synchronous>, transform_indices = @transform_1, window_bounds = array<i64: 16, 128>}, {transform_indices = @transform_2, window_bounds = array<i64: 1, 2, 128>}]} {
    %c0 = arith.constant 0 : index
    %c0_0 = arith.constant 0 : index
    %0 = vector.load %arg1[%c0, %c0_0] : memref<64x16xf32, #tpu.memory_space<vmem>>, vector<64x16xf32>
    %1 = arith.truncf %0 : vector<64x16xf32> to vector<64x16xbf16>
    %c0_1 = arith.constant 0 : index
    %c0_2 = arith.constant 0 : index
    %2 = vector.load %arg2[%c0_1, %c0_2] : memref<16x128xbf16, #tpu.memory_space<vmem>>, vector<16x128xbf16>
    %cst = arith.constant dense<0.000000e+00> : vector<64x128xf32>
    %3 = tpu.matmul %1, %2, %cst {dimension_numbers = #tpu.dot_dimension_numbers<[1], [0], [0], [1], [0, 0, 1, 1], [], []>} : vector<64x16xbf16>, vector<16x128xbf16>, vector<64x128xf32> -> vector<64x128xf32>
    %cst_3 = arith.constant dense<0.000000e+00> : vector<128xf32>
    %4 = vector.multi_reduction <add>, %3, %cst_3 [0] : vector<64x128xf32> to vector<128xf32>
    %5 = vector.shape_cast %4 : vector<128xf32> to vector<1x128xf32>
    %c0_4 = arith.constant 0 : index
    %c0_5 = arith.constant 0 : index
    %c0_6 = arith.constant 0 : index
    %6 = vector.load %arg3[%c0_4, %c0_5, %c0_6] : memref<1x2x128xf32, #tpu.memory_space<vmem>>, vector<1x1x128xf32>
    %7 = vector.shape_cast %6 : vector<1x1x128xf32> to vector<1x128xf32>
    %8 = vector.shape_cast %5 : vector<1x128xf32> to vector<1x1x128xf32>
    tpu.vector_store %arg3[%c0_4, %c0_5, %c0_6], %8 {strides = array<i32>} : memref<1x2x128xf32, #tpu.memory_space<vmem>>, vector<1x1x128xf32>,
    %9 = arith.mulf %3, %3 : vector<64x128xf32>
    %cst_7 = arith.constant dense<0.000000e+00> : vector<128xf32>
    %10 = vector.multi_reduction <add>, %9, %cst_7 [0] : vector<64x128xf32> to vector<128xf32>
    %11 = vector.shape_cast %10 : vector<128xf32> to vector<1x128xf32>
    %c0_8 = arith.constant 0 : index
    %c1 = arith.constant 1 : index
    %c0_9 = arith.constant 0 : index
    %12 = vector.load %arg3[%c0_8, %c1, %c0_9] : memref<1x2x128xf32, #tpu.memory_space<vmem>>, vector<1x1x128xf32>
    %13 = vector.shape_cast %12 : vector<1x1x128xf32> to vector<1x128xf32>
    %14 = vector.shape_cast %11 : vector<1x128xf32> to vector<1x1x128xf32>
    tpu.vector_store %arg3[%c0_8, %c1, %c0_9], %14 {strides = array<i32>} : memref<1x2x128xf32, #tpu.memory_space<vmem>>, vector<1x1x128xf32>,
    return
  }
  func.func @transform_0(%arg0: i32) -> (i32, i32) {
    %c0_i32 = arith.constant 0 : i32
    %c0_i32_0 = arith.constant 0 : i32
    return %arg0, %c0_i32 : i32, i32
  }
  func.func @transform_1(%arg0: i32) -> (i32, i32) {
    %c0_i32 = arith.constant 0 : i32
    %c0_i32_0 = arith.constant 0 : i32
    %c0_i32_1 = arith.constant 0 : i32
    return %c0_i32, %c0_i32_0 : i32, i32
  }
  func.func @transform_2(%arg0: i32) -> (i32, i32, i32) {
    %c0_i32 = arith.constant 0 : i32
    %c0_i32_0 = arith.constant 0 : i32
    %c0_i32_1 = arith.constant 0 : i32
    return %arg0, %c0_i32, %c0_i32_0 : i32, i32, i32
  }
}

</mosaic_0001>

<bundles_post_ra>
// kernel: tpu_custom_call.1
= control target key start
LH: loop header
LB: loop body
LE: loop exit
PB: predicated region body
PF: predicated region fallthrough
CT: control target
= control target key end

     0   :  { %7 = vsyncpa [#allocation3], 0  ;;  %s607_s0 = inlined_call_operand.vmem [shape: f32[256,16], index: 0, kind: input, shape index: {}]   ;;  %s608_s1 = inlined_call_operand.vmem [shape: bf16[16,128], index: 1, kind: input, shape index: {}]   ;;  %s609_s2 = inlined_call_operand.hbm [shape: f32[4,2,128], index: 2, kind: output, shape index: {}]  }
   0x1   :  { %9 = vsyncpa [#allocation3 + $0x1], 0  ;;  %s505_s9 = smov 0   ;;  %s507_s10 = smov 0  }
   0x2   :  { %s509_s11 = smov 0   ;;  %s511_s12 = smov 0  }
   0x3 LB: > { %s526_s13 = sadd.s32 4294967295, %s487_s12   ;;  %s352_s14 = sadd.s32 4294967294, %s487_s12   ;;  %s487_s12 = sphi %s511_s12, %s615_s12   ;;  %s483_s11 = sphi %s509_s11, %s614_s11   ;;  %s479_s10 = sphi %s507_s10, %s613_s10   ;;  %s475_s9 = sphi %s505_s9, %s612_s9  }
   0x4   : > { %s530_s15 = sadd.s32 1, %s487_s12   ;;  %s69_s16 = sadd.s32 1, %s483_s11 }
   0x5   : > { %s66_s17 = ssub.s32 %s487_s12, %s530_s15  ;;  %p79_p0 = scmp.ne.s32.totalorder %s483_s11, %s479_s10 }
   0x6   : > { %p67_p1 = scmp.eq.s32.totalorder %s66_s17, 0  ;;  %p80_p2 = scmp.eq.s32.totalorder %s526_s13, 3 }
   0x7   : > { %p85_p3 = scmp.ne.s32.totalorder %s479_s10, %s475_s9  ;;  %p86_p4 = scmp.eq.s32.totalorder %s352_s14, 3 }
   0x8   : > { %s541_s18 = scalar_select %p67_p1, %s483_s11, %s69_s16  }
   0x9   : > { %p543_p5 = por %p80_p2, %p79_p0  ;;  %p547_p6 = por %p86_p4, %p85_p3 }
   0xa   : > { %p355_p7 = scmp.ge.s32.totalorder %s487_s12, 1  ;;  %p116_p8 = scmp.lt.s32.totalorder %s487_s12, 5 }
   0xc   : > { %p117_p9 = pnand %p355_p7, %p116_p8 }
   0xd   : > { %v424_v0 = vld [vmem:[%s608_s1] sm:$0xff] (!%p117_p9)   ;;  %s357_s23 = sshll.u32 (!%p117_p9), %s526_s13, 3  ;;  %vm165_vm0 = vcmask (!%p117_p9), 130048   ;;  %s135_s28 = sand.u32 (!%p117_p9), 1, %s479_s10  }
   0xe   : > { %120 = sbr.rel (%p117_p9) target bundleno = 285 (0x11d), region = 28  ;;  %p139_p10 = scmp.lt.s32.totalorder (!%p117_p9), %s357_s23, 31  ;;  %373 = vmatprep.subr.bf16.mxu0 (!%p117_p9), %v424_v0  ;;  %383 = vmatprep.subr.bf16.mxu1 (!%p117_p9), %v424_v0 }
   0xf   : > { %374 = vmatpush3.bf16.msra.mxu0 (!%p117_p9), %v424_v0  ;;  %384 = vmatpush3.bf16.msra.mxu1 (!%p117_p9), %v424_v0  ;;  %s356_s29 = sshll.u32 (!%p117_p9), %s135_s28, 1  ;;  %s365_s30 = sshll.u32 (!%p117_p9), %s526_s13, 5 }
  0x10   : > { %s137_s3 = scalar_lea.vmem (!%p117_p9), [#allocation2], %s356_s29  ;;  %s565_s7 = scalar_lea.hbm (!%p117_p9), %s609_s2, %s365_s30 }
  0x11   : > { %s293_s4 = sshll.u32 (!%p117_p9), %s137_s3, 4  ;;  %s280_s8 = scalar_lea.sflag (!%p117_p9), [#allocation3], %s135_s28  ;;  %s567_s4 = int_to_ptr.vmem [resolvable:$true] %s293_s4 }
  0x12   : > { %s425_s14 = scalar_lea.vmem (!%p117_p9), %s567_s4, 32  ;;  %s489_s13 = smov (!%p117_p9), [#allocation2]  }
  0x13   : > { %p426_p11 = scmp.ne.s32.totalorder (!%p117_p9), %s567_s4, %s425_s14  ;;  %s429_s16 = sshll.u32 (!%p117_p9), %s489_s13, 4  ;;  %s430_s16 = int_to_ptr.vmem [resolvable:$false] %s429_s16 }
  0x14   : > { %s431_s17 = scalar_lea.vmem (!%p117_p9), %s430_s16, 64  ;;  %p432_p0 = scmp.lt.s32.totalorder (!%p117_p9), %s567_s4, %s430_s16 }
  0x15   : > { %s617_s23 = smov (!%p139_p10, %s357_s23), 31  ;;  %p427_p12 = pnand %p426_p11, %p543_p5 }
  0x16   : > { %s358_s24 = sshll.u32 %s617_s23, 3  ;;  %p433_p1 = scmp.lt.s32.totalorder %s431_s17, %s425_s14 }
  0x17   : > { %s142_s27 = scalar_lea.vmem %s607_s0, %s358_s24  ;;  %p428_p13 = pneg %p427_p12 }
  0x18   : > { %v145_v1 = vld [vmem:[%s142_s27] sm:$0xff]  ;;  %v146_v2 = vld [vmem:[%s142_s27 + $0x8] sm:$0xff]  ;;  %v147_v3 = vld [vmem:[%s142_s27 + $0x10] sm:$0xff]  ;;  %p434_p2 = por %p433_p1, %p432_p0 }
  0x19   : > { %v153_v4 = vpack.c.bf16 %v146_v2, %v145_v1  ;;  %v148_v5 = vld [vmem:[%s142_s27 + $0x18] sm:$0xff]  ;;  %v149_v6 = vld [vmem:[%s142_s27 + $0x20] sm:$0xff]  ;;  %v150_v7 = vld [vmem:[%s142_s27 + $0x28] sm:$0xff] }
  0x1a   : > { %v154_v8 = vpack.c.bf16 %v148_v5, %v147_v3  ;;  %v155_v9 = vpack.c.bf16 %v150_v7, %v149_v6  ;;  %v151_v10 = vld [vmem:[%s142_s27 + $0x30] sm:$0xff]  ;;  %v152_v11 = vld [vmem:[%s142_s27 + $0x38] sm:$0xff]  ;;  %p435_p3 = pnand %p434_p2, %p428_p13 }
  0x1b   : > { %375 = vmatprep.mubr.msk.bf16.mxu0 %vm165_vm0, %v153_v4  ;;  %v156_v12 = vpack.c.bf16 %v152_v11, %v151_v10 }
  0x1c   : > { %376 = vmatmul.mubr.msk.bf16.vlgmr.msra.gmra.mrb[0].mxu0 %vm165_vm0, %v154_v8  ;;  %379 = vmatprep.mubr.msk.bf16.mxu1 %vm165_vm0, %v155_v9 }
  0x1d   : > { %380 = vmatmul.mubr.msk.bf16.vlgmr.msra.gmra.mrb[0].mxu1 %vm165_vm0, %v156_v12 }
  0xef   : > { %v377_v13 = vpop.f32.mrb[0].mxu0 }
  0xf0   : > { %v212_v14 = vpop.f32.mrb[1].mxu0  ;;  %v381_v15 = vpop.f32.mrb[0].mxu1  ;;  %v259_v24 = vmul.f32 %v377_v13, %v377_v13 }
  0xf1   : > { %v378_v16 = vpop.f32.mrb[2].mxu0  ;;  %v228_v17 = vpop.f32.mrb[1].mxu1  ;;  %v257_v20 = vmul.f32 %v212_v14, %v212_v14  ;;  %v263_v36 = vmul.f32 %v381_v15, %v381_v15 }
  0xf2   : > { %v215_v18 = vpop.f32.mrb[3].mxu0  ;;  %v382_v19 = vpop.f32.mrb[2].mxu1  ;;  %v260_v27 = vmul.f32 %v378_v16, %v378_v16  ;;  %v261_v30 = vmul.f32 %v228_v17, %v228_v17 }
  0xf3   : > { %v243_v21 = vadd.f32 %v215_v18, %v212_v14  ;;  %v258_v22 = vmul.f32 %v215_v18, %v215_v18  ;;  %v231_v23 = vpop.f32.mrb[3].mxu1  ;;  %v264_v39 = vmul.f32 %v382_v19, %v382_v19 }
  0xf4   : > { %v262_v35 = vmul.f32 %v231_v23, %v231_v23 }
  0xf5   : > { %v244_v25 = vadd.f32 %v377_v13, %v243_v21  ;;  %v265_v26 = vadd.f32 %v258_v22, %v257_v20 }
  0xf7   : > { %v266_v28 = vadd.f32 %v265_v26, %v259_v24  ;;  %v245_v29 = vadd.f32 %v378_v16, %v244_v25 }
  0xf9   : > { %v246_v31 = vadd.f32 %v245_v29, %v228_v17  ;;  %v267_v32 = vadd.f32 %v266_v28, %v260_v27 }
  0xfb   : > { %v268_v33 = vadd.f32 %v267_v32, %v261_v30  ;;  %v247_v34 = vadd.f32 %v246_v31, %v231_v23 }
  0xfd   : > { %v248_v37 = vadd.f32 %v381_v15, %v247_v34  ;;  %v269_v38 = vadd.f32 %v268_v33, %v262_v35 }
  0xff   : > { %v249_v40 = vadd.f32 %v382_v19, %v248_v37  ;;  %v270_v41 = vadd.f32 %v269_v38, %v263_v36 }
 0x101   : > { %v250_v42 = vrot.slane %v249_v40, 4  ;;  %v271_v43 = vadd.f32 %v270_v41, %v264_v39 }
 0x103   : > { %v251_v44 = vadd.f32 %v250_v42, %v249_v40  ;;  %v272_v45 = vrot.slane %v271_v43, 4 }
 0x105   : > { %v252_v46 = vrot.slane %v251_v44, 2  ;;  %v273_v47 = vadd.f32 %v272_v45, %v271_v43 }
 0x107   : > { %v253_v48 = vadd.f32 %v252_v46, %v251_v44  ;;  %v274_v49 = vrot.slane %v273_v47, 2 }
 0x109   : > { %v254_v50 = vrot.slane %v253_v48, 1  ;;  %v275_v51 = vadd.f32 %v274_v49, %v273_v47 }
 0x10b   : > { %v255_v52 = vadd.f32 %v254_v50, %v253_v48  ;;  %v276_v53 = vrot.slane %v275_v51, 1 }
 0x10d   : > { %256 = vst [vmem:[%s137_s3] sm:$0x1] %v255_v52  ;;  %v277_v54 = vadd.f32 %v276_v53, %v275_v51 }
 0x10f   : > { %278 = vst [vmem:[%s137_s3 + $0x1] sm:$0x1] %v277_v54 }
 0x110   : > { %438 = shalt.err (!%p435_p3)
}
 0x111   : > { %s439_s21 = scalar_lea.hbm %s565_s7, 32  ;;  %s443_s24 = scalar_lea.hbm %s609_s2, 128 }
 0x112   : > { %p440_p4 = scmp.ne.s32.totalorder %s565_s7, %s439_s21  ;;  %p444_p9 = scmp.lt.u32.totalorder %s565_s7, %s609_s2 }
 0x113   : > { %p445_p10 = scmp.lt.u32.totalorder %s443_s24, %s439_s21  ;;  %p447_p12 = scmp.lt.u32.totalorder %s439_s21, %s565_s7 }
 0x114   : > { %p441_p7 = pnand %p440_p4, %p543_p5 }
 0x115   : > { %p446_p11 = por %p445_p10, %p444_p9 }
 0x116   : > { %p442_p8 = pneg %p441_p7 }
 0x117   : > { %p448_p13 = por %p447_p12, %p446_p11 }
 0x119   : > { %p449_p0 = pnand %p448_p13, %p442_p8 }
 0x11b   : > { %452 = shalt.err (!%p449_p0)
}
 0x11c   : > { %385 = dma.vmem_to_hbm [thread:$0]  (%p543_p5), %s567_s4, 32, %s565_s7, %s280_s8  }
 0x11d PF: > { %p391_p1 = scmp.ge.s32.totalorder %s487_s12, 2  ;;  %s305_s27 = sand.u32 1, %s475_s9  }
 0x11e   : > { %s306_s28 = scalar_lea.sflag [#allocation3], %s305_s27 }
 0x11f   : > { %p388_p2 = pnand %p391_p1, %p547_p6 }
 0x121   : > { %470 = dma.done.wait (!%p388_p2), %s306_s28, 32  }
 0x122   : > { %472 = vsyncadd (!%p388_p2), %s306_s28, 4294967264  ;;  %p12_p3 = scmp.ge.s32.totalorder %s530_s15, 6   ;;  %s612_s9 = smov %s479_s10 }
 0x123   : > { %s613_s10 = smov %s483_s11  ;;  %s614_s11 = smov %s541_s18 }
 0x124   : > { %s615_s12 = smov %s530_s15  ;;  %14 = sbr.rel (!%p12_p3) target bundleno = 3 (0x3), region = 63 }
 0x12b   :  { %311 = vsyncpa [#allocation3], 1 }
 0x12c   :  { %313 = vsyncpa [#allocation3 + $0x1], 1 }

</bundles_post_ra>
